<compile_context>
chip_gen: v5e
topology: v5e:2x2
jax: 0.10.0
libtpu: 0.0.40
codegen_flags: <defaults>
</compile_context>

<pallas_src>
import math

import jax
import jax.numpy as jnp
from jax.experimental import pallas as pl
from jax.experimental.pallas import tpu as pltpu

_LANE = 128


def _gelu_tanh(x):
    # GELU(approximate='tanh'): 0.5*x*(1 + tanh(sqrt(2/pi)*(x + 0.044715*x^3)))
    c = math.sqrt(2.0 / math.pi)
    return 0.5 * x * (1.0 + jnp.tanh(c * (x + 0.044715 * x * x * x)))


def _round_up(x, m):
    return (x + m - 1) // m * m


def mlp_kernel(x_ref, w1_ref, w2_ref, out_ref):
    # x_ref:  VMEM (block_m, Cp)  bf16   -- one M-tile of the flattened input
    # w1_ref: VMEM (Cp, Hp)       bf16   -- fc1 weight (in, hidden), grid-invariant
    # w2_ref: VMEM (Hp, Hop)      bf16   -- fc2 weight (hidden, out), grid-invariant
    # out_ref:VMEM (block_m, Hop) f32
    h = jnp.dot(x_ref[...], w1_ref[...], preferred_element_type=jnp.float32)
    h = _gelu_tanh(h)                              # f32 GELU (EUP tanh, VPU f32)
    out = jnp.dot(h.astype(w2_ref.dtype), w2_ref[...],
                  preferred_element_type=jnp.float32)
    out_ref[...] = out.astype(out_ref.dtype)


def mlp_forward(x2d, w1, w2, *, block_m=256):
    """Tiled 2-layer MLP. x2d: (M, C); w1: (C, H); w2: (H, Ho) -> (M, Ho)."""
    M, C = x2d.shape
    H = w1.shape[1]
    Ho = w2.shape[1]
    out_dtype = x2d.dtype

    # Pad to MXU/vreg friendly shapes: lanes (last dim) to 128, M to block_m.
    Mp = _round_up(max(M, 1), block_m)
    Cp = _round_up(C, _LANE)
    Hp = _round_up(H, _LANE)
    Hop = _round_up(Ho, _LANE)

    # Zero padding is exact: padded x cols / w1 rows contribute 0, gelu(0)=0,
    # padded w2 rows/cols contribute 0 and are sliced away.
    xb = jnp.zeros((Mp, Cp), jnp.bfloat16).at[:M, :C].set(x2d.astype(jnp.bfloat16))
    w1b = jnp.zeros((Cp, Hp), jnp.bfloat16).at[:C, :H].set(w1.astype(jnp.bfloat16))
    w2b = jnp.zeros((Hp, Hop), jnp.bfloat16).at[:H, :Ho].set(w2.astype(jnp.bfloat16))

    grid = (Mp // block_m,)
    out = pl.pallas_call(
        mlp_kernel,
        out_shape=jax.ShapeDtypeStruct((Mp, Hop), out_dtype),
        grid=grid,
        in_specs=[
            pl.BlockSpec((block_m, Cp), lambda i: (i, 0)),   # streamed M-tiles
            pl.BlockSpec((Cp, Hp), lambda i: (0, 0)),        # fc1 weight (resident)
            pl.BlockSpec((Hp, Hop), lambda i: (0, 0)),       # fc2 weight (resident)
        ],
        out_specs=pl.BlockSpec((block_m, Hop), lambda i: (i, 0)),
        compiler_params=pltpu.CompilerParams(
            dimension_semantics=("parallel",),               # megacore-shardable M
            vmem_limit_bytes=64 * 1024 * 1024,
        ),
    )(xb, w1b, w2b)
    return out[:M, :Ho]


def caption_embedder_forward(caption, uncond_embedding, w1, w2, *,
                             train, uncond_prob, force_drop_ids=None,
                             rng=None, block_m=256):
    """Mirrors CaptionEmbedder.forward.

    caption: (B, T, C) f32; uncond_embedding: (T, C);
    w1: (C, H) = fc1.weight.T; w2: (H, H) = fc2.weight.T (both bias-free).
    """
    B, T, C = caption.shape
    use_dropout = uncond_prob > 0
    if (train and use_dropout) or (force_drop_ids is not None):
        if force_drop_ids is None:
            # TODO(synk): torch.rand-based stochastic drop not reproduced
            #             bit-exact; uses jax.random with an explicit key.
            drop = jax.random.uniform(rng, (B,)) < uncond_prob
        else:
            drop = force_drop_ids == 1
        caption = jnp.where(drop[:, None, None],
                            uncond_embedding[None].astype(caption.dtype),
                            caption)
    x2d = caption.reshape(B * T, C)
    out = mlp_forward(x2d, w1, w2, block_m=block_m)
    return out.reshape(B, T, w2.shape[1])


def reference_forward(caption, drop_ids, uncond_embedding, w1, w2):
    # Pure f32 reference of token_drop + MLP(tanh-GELU), bias-free.
    x = jnp.where(drop_ids[:, None, None] == 1, uncond_embedding[None], caption)
    h = _gelu_tanh(x @ w1)
    return h @ w2


if __name__ == "__main__":
    # Small shapes consistent with the module: caption (B, token_num, in_channels)
    B, T, C, H = 2, 8, 16, 32      # batch, token_num, in_channels, hidden_size
    uncond_prob = 0.1              # > 0, so the dropout path is active when train=True

    key = jax.random.PRNGKey(0)
    k_cap, k_unc, k_w1, k_w2 = jax.random.split(key, 4)

    caption = jax.random.normal(k_cap, (B, T, C), dtype=jnp.float32)
    # register_buffer('uncond_embedding', randn(token_num, in_channels)/sqrt(C))
    uncond_embedding = jax.random.normal(k_unc, (T, C), dtype=jnp.float32) / math.sqrt(C)
    # nn.Linear weights are (out, in); store transposed (in, out) for the kernel.
    w1 = jax.random.normal(k_w1, (C, H), dtype=jnp.float32) * 0.02   # fc1.weight.T
    w2 = jax.random.normal(k_w2, (H, H), dtype=jnp.float32) * 0.02   # fc2.weight.T

    # Deterministic force_drop_ids exercises the token_drop path.
    force_drop_ids = jnp.array([1, 0], dtype=jnp.int32)

    out = caption_embedder_forward(
        caption, uncond_embedding, w1, w2,
        train=True, uncond_prob=uncond_prob, force_drop_ids=force_drop_ids)
    out = jax.block_until_ready(out)

    ref = reference_forward(caption, force_drop_ids, uncond_embedding, w1, w2)
    assert out.shape == (B, T, H)
    # Matmuls run with bf16 operands (f32 accumulation), so compare against the
    # f32 reference with a bf16-appropriate tolerance.
    assert jnp.allclose(out, ref, atol=1e-2, rtol=1e-2), \
        float(jnp.max(jnp.abs(out - ref)))

    print("KERNEL_OK")
</pallas_src>

<mosaic_0001>
module attributes {stable_mosaic.version = 11 : i64} {
  func.func @mlp_kernel(%arg0: i32, %arg1: memref<256x128xbf16, #tpu.memory_space<vmem>>, %arg2: memref<128x128xbf16, #tpu.memory_space<vmem>>, %arg3: memref<128x128xbf16, #tpu.memory_space<vmem>>, %arg4: memref<256x128xf32, #tpu.memory_space<vmem>>) attributes {dimension_semantics = [#tpu.dimension_semantics<parallel>], iteration_bounds = array<i64: 1>, scalar_prefetch = 0 : i64, scratch_operands = 0 : i64, tpu.core_type = #tpu.core_type<tc>, window_params = [{transform_indices = @transform_0, window_bounds = array<i64: 256, 128>}, {pipeline_mode = #tpu.pipeline_mode<synchronous>, transform_indices = @transform_1, window_bounds = array<i64: 128, 128>}, {pipeline_mode = #tpu.pipeline_mode<synchronous>, transform_indices = @transform_2, window_bounds = array<i64: 128, 128>}, {transform_indices = @transform_3, window_bounds = array<i64: 256, 128>}]} {
    %c0 = arith.constant 0 : index
    %c0_0 = arith.constant 0 : index
    %0 = vector.load %arg1[%c0, %c0_0] : memref<256x128xbf16, #tpu.memory_space<vmem>>, vector<256x128xbf16>
    %c0_1 = arith.constant 0 : index
    %c0_2 = arith.constant 0 : index
    %1 = vector.load %arg2[%c0_1, %c0_2] : memref<128x128xbf16, #tpu.memory_space<vmem>>, vector<128x128xbf16>
    %cst = arith.constant dense<0.000000e+00> : vector<256x128xf32>
    %2 = tpu.matmul %0, %1, %cst {dimension_numbers = #tpu.dot_dimension_numbers<[1], [0], [0], [1], [0, 0, 1, 1], [], []>} : vector<256x128xbf16>, vector<128x128xbf16>, vector<256x128xf32> -> vector<256x128xf32>
    %cst_3 = arith.constant 5.000000e-01 : f32
    %3 = vector.broadcast %cst_3 : f32 to vector<256x128xf32>
    %4 = arith.mulf %3, %2 : vector<256x128xf32>
    %cst_4 = arith.constant 4.471500e-02 : f32
    %5 = vector.broadcast %cst_4 : f32 to vector<256x128xf32>
    %6 = arith.mulf %5, %2 : vector<256x128xf32>
    %7 = arith.mulf %6, %2 : vector<256x128xf32>
    %8 = arith.mulf %7, %2 : vector<256x128xf32>
    %9 = arith.addf %2, %8 : vector<256x128xf32>
    %cst_5 = arith.constant 0.797884583 : f32
    %10 = vector.broadcast %cst_5 : f32 to vector<256x128xf32>
    %11 = arith.mulf %10, %9 : vector<256x128xf32>
    %12 = math.tanh %11 : vector<256x128xf32>
    %cst_6 = arith.constant 1.000000e+00 : f32
    %13 = vector.broadcast %cst_6 : f32 to vector<256x128xf32>
    %14 = arith.addf %13, %12 : vector<256x128xf32>
    %15 = arith.mulf %4, %14 : vector<256x128xf32>
    %16 = arith.truncf %15 : vector<256x128xf32> to vector<256x128xbf16>
    %c0_7 = arith.constant 0 : index
    %c0_8 = arith.constant 0 : index
    %17 = vector.load %arg3[%c0_7, %c0_8] : memref<128x128xbf16, #tpu.memory_space<vmem>>, vector<128x128xbf16>
    %cst_9 = arith.constant dense<0.000000e+00> : vector<256x128xf32>
    %18 = tpu.matmul %16, %17, %cst_9 {dimension_numbers = #tpu.dot_dimension_numbers<[1], [0], [0], [1], [0, 0, 1, 1], [], []>} : vector<256x128xbf16>, vector<128x128xbf16>, vector<256x128xf32> -> vector<256x128xf32>
    %c0_10 = arith.constant 0 : index
    %c0_11 = arith.constant 0 : index
    %19 = vector.load %arg4[%c0_10, %c0_11] : memref<256x128xf32, #tpu.memory_space<vmem>>, vector<256x128xf32>
    tpu.vector_store %arg4[%c0_10, %c0_11], %18 {strides = array<i32>} : memref<256x128xf32, #tpu.memory_space<vmem>>, vector<256x128xf32>,
    return
  }
  func.func @transform_0(%arg0: i32) -> (i32, i32) {
    %c0_i32 = arith.constant 0 : i32
    %c0_i32_0 = arith.constant 0 : i32
    return %arg0, %c0_i32 : i32, i32
  }
  func.func @transform_1(%arg0: i32) -> (i32, i32) {
    %c0_i32 = arith.constant 0 : i32
    %c0_i32_0 = arith.constant 0 : i32
    %c0_i32_1 = arith.constant 0 : i32
    return %c0_i32, %c0_i32_0 : i32, i32
  }
  func.func @transform_2(%arg0: i32) -> (i32, i32) {
    %c0_i32 = arith.constant 0 : i32
    %c0_i32_0 = arith.constant 0 : i32
    %c0_i32_1 = arith.constant 0 : i32
    return %c0_i32, %c0_i32_0 : i32, i32
  }
  func.func @transform_3(%arg0: i32) -> (i32, i32) {
    %c0_i32 = arith.constant 0 : i32
    %c0_i32_0 = arith.constant 0 : i32
    return %arg0, %c0_i32 : i32, i32
  }
}

</mosaic_0001>

<bundles_post_ra>
// kernel: tpu_custom_call.1
= control target key start
LH: loop header
LB: loop body
LE: loop exit
PB: predicated region body
PF: predicated region fallthrough
CT: control target
= control target key end

     0   :  { %8 = vsyncpa [#allocation3], 0  ;;  %s1333_s0 = inlined_call_operand.hbm [shape: bf16[256,128], index: 0, kind: input, shape index: {}]   ;;  %s1334_s1 = inlined_call_operand.hbm [shape: bf16[128,128], index: 1, kind: input, shape index: {}]   ;;  %s1335_s2 = inlined_call_operand.hbm [shape: bf16[128,128], index: 2, kind: input, shape index: {}]   ;;  %s1336_s3 = inlined_call_operand.hbm [shape: f32[256,128], index: 3, kind: output, shape index: {}]  }
   0x1   :  { %9 = vsyncpa [#allocation6], 0 }
   0x2   :  { %10 = vsyncpa [#allocation4], 0  ;;  %s28_s14 = sshll.u32 %s1334_s1, 4  ;;  %s1202_s15 = smov [#allocation5]   ;;  %s29_s14 = int_to_ptr.hbm [resolvable:$true] %s28_s14 }
   0x3   :  { %s30_s16 = sshll.u32 %s1202_s15, 4  ;;  %s15_s19 = sshll.u32 %s1333_s0, 4  ;;  %s31_s16 = int_to_ptr.vmem [resolvable:$true] %s30_s16  ;;  %s16_s19 = int_to_ptr.hbm [resolvable:$true] %s15_s19 }
   0x4   :  { %s1203_s20 = smov 64   ;;  %s1204_s21 = smov 4  }
   0x5   :  { %36 = dma.hbm_to_vmem [thread:$0]  %s29_s14, 1024, %s31_s16, [#allocation6], %s1203_s20, %s1203_s20, %s1204_s21  }
   0x6   :  { %s1205_s22 = smov [#allocation2]   ;;  %s41_s26 = sshll.u32 %s1335_s2, 4  ;;  %s42_s26 = int_to_ptr.hbm [resolvable:$true] %s41_s26 }
   0x7   :  { %s17_s23 = sshll.u32 %s1205_s22, 4  ;;  %s1206_s1 = smov [#allocation7]   ;;  %s18_s23 = int_to_ptr.vmem [resolvable:$true] %s17_s23 }
   0x8   :  { %23 = dma.hbm_to_vmem [thread:$0]  %s16_s19, 2048, %s18_s23, [#allocation3], %s1203_s20, %s1203_s20, %s1204_s21  }
   0x9   :  { %s43_s27 = sshll.u32 %s1206_s1, 4  ;;  %s44_s27 = int_to_ptr.vmem [resolvable:$true] %s43_s27 }
   0xa   :  { %49 = dma.hbm_to_vmem [thread:$0]  %s42_s26, 1024, %s44_s27, [#allocation6], %s1203_s20, %s1203_s20, %s1204_s21  }
   0xb   :  { %1196 = dma.done.wait [#allocation3], 2048  }
   0xc   :  { %1197 = vsyncadd [#allocation3], 4294965248 }
   0xd   :  { %1198 = dma.done.wait [#allocation6], 2048  }
   0xe   :  { %1199 = vsyncadd [#allocation6], 4294965248  ;;  %v1003_v0 = vld [vmem:[#allocation5 + $0x38] sm:$0xff]  ;;  %v1002_v1 = vld [vmem:[#allocation5 + $0x30] sm:$0xff]  ;;  %s1207_s0 = smov [#allocation8]   ;;  %s838_s30 = sshll.u32 %s1336_s3, 4  ;;  %s839_s30 = int_to_ptr.hbm [resolvable:$true] %s838_s30 }
   0xf   :  { %254 = vmatpush.bf16.msra.mxu0 %v1003_v0  ;;  %1012 = vmatpush.bf16.msra.mxu2 %v1003_v0  ;;  %v1001_v2 = vld [vmem:[#allocation5 + $0x28] sm:$0xff]  ;;  %v1000_v3 = vld [vmem:[#allocation5 + $0x20] sm:$0xff]  ;;  %v999_v4 = vld [vmem:[#allocation5 + $0x18] sm:$0xff]  ;;  %s836_s2 = sshll.u32 %s1207_s0, 4  ;;  %s1208_s4 = smov 128   ;;  %s837_s2 = int_to_ptr.vmem [resolvable:$true] %s836_s2 }
  0x10   :  { %v998_v5 = vld [vmem:[#allocation5 + $0x10] sm:$0xff]  ;;  %v997_v6 = vld [vmem:[#allocation5 + $0x8] sm:$0xff]  ;;  %v996_v7 = vld [vmem:[#allocation5] sm:$0xff]  ;;  %s1209_s5 = smov 8  }
  0x11   :  { %v980_v8 = vld [vmem:[#allocation2] sm:$0xff]  ;;  %v981_v10 = vld [vmem:[#allocation2 + $0x8] sm:$0xff]  ;;  %v982_v12 = vld [vmem:[#allocation2 + $0x10] sm:$0xff] }
  0x12   :  { %v988_v9 = vld [vmem:[#allocation2 + $0x40] sm:$0xff]  ;;  %v989_v11 = vld [vmem:[#allocation2 + $0x48] sm:$0xff]  ;;  %v990_v13 = vld [vmem:[#allocation2 + $0x50] sm:$0xff] }
  0x13   :  { %255 = vmatpush.bf16.msra.mxu0 %v1002_v1  ;;  %1013 = vmatpush.bf16.msra.mxu2 %v1002_v1  ;;  %v983_v14 = vld [vmem:[#allocation2 + $0x18] sm:$0xff]  ;;  %v984_v16 = vld [vmem:[#allocation2 + $0x20] sm:$0xff]  ;;  %v985_v18 = vld [vmem:[#allocation2 + $0x28] sm:$0xff] }
  0x14   :  { %v991_v15 = vld [vmem:[#allocation2 + $0x58] sm:$0xff]  ;;  %v992_v17 = vld [vmem:[#allocation2 + $0x60] sm:$0xff]  ;;  %v993_v19 = vld [vmem:[#allocation2 + $0x68] sm:$0xff] }
  0x15   :  { %v986_v20 = vld [vmem:[#allocation2 + $0x30] sm:$0xff]  ;;  %v1011_v22 = vld [vmem:[#allocation7 + $0x38] sm:$0xff]  ;;  %v1009_v24 = vld [vmem:[#allocation7 + $0x28] sm:$0xff] }
  0x16   :  { %v994_v21 = vld [vmem:[#allocation2 + $0x70] sm:$0xff]  ;;  %711 = vmatpush.bf16.msra.mxu1 %v1011_v22  ;;  %1020 = vmatpush.bf16.msra.mxu3 %v1011_v22  ;;  %v1008_v25 = vld [vmem:[#allocation7 + $0x20] sm:$0xff]  ;;  %v987_v26 = vld [vmem:[#allocation2 + $0x38] sm:$0xff] }
  0x17   :  { %256 = vmatpush.bf16.msra.mxu0 %v1001_v2  ;;  %1014 = vmatpush.bf16.msra.mxu2 %v1001_v2  ;;  %v1010_v23 = vld [vmem:[#allocation7 + $0x30] sm:$0xff]  ;;  %v995_v27 = vld [vmem:[#allocation2 + $0x78] sm:$0xff]  ;;  %v1005_v30 = vld [vmem:[#allocation7 + $0x8] sm:$0xff] }
  0x18   :  { %v1007_v28 = vld [vmem:[#allocation7 + $0x18] sm:$0xff]  ;;  %v1006_v29 = vld [vmem:[#allocation7 + $0x10] sm:$0xff]  ;;  %v1004_v31 = vld [vmem:[#allocation7] sm:$0xff] }
  0x1a   :  { %712 = vmatpush.bf16.msra.mxu1 %v1010_v23  ;;  %1021 = vmatpush.bf16.msra.mxu3 %v1010_v23 }
  0x1b   :  { %257 = vmatpush.bf16.msra.mxu0 %v1000_v3  ;;  %1015 = vmatpush.bf16.msra.mxu2 %v1000_v3 }
  0x1e   :  { %713 = vmatpush.bf16.msra.mxu1 %v1009_v24  ;;  %1022 = vmatpush.bf16.msra.mxu3 %v1009_v24 }
  0x1f   :  { %258 = vmatpush.bf16.msra.mxu0 %v999_v4  ;;  %1016 = vmatpush.bf16.msra.mxu2 %v999_v4 }
  0x22   :  { %714 = vmatpush.bf16.msra.mxu1 %v1008_v25  ;;  %1023 = vmatpush.bf16.msra.mxu3 %v1008_v25 }
  0x23   :  { %259 = vmatpush.bf16.msra.mxu0 %v998_v5  ;;  %1017 = vmatpush.bf16.msra.mxu2 %v998_v5 }
  0x26   :  { %715 = vmatpush.bf16.msra.mxu1 %v1007_v28  ;;  %1024 = vmatpush.bf16.msra.mxu3 %v1007_v28 }
  0x27   :  { %260 = vmatpush.bf16.msra.mxu0 %v997_v6  ;;  %1018 = vmatpush.bf16.msra.mxu2 %v997_v6 }
  0x2a   :  { %716 = vmatpush.bf16.msra.mxu1 %v1006_v29  ;;  %1025 = vmatpush.bf16.msra.mxu3 %v1006_v29 }
  0x2b   :  { %261 = vmatpush.bf16.msra.mxu0 %v996_v7  ;;  %1019 = vmatpush.bf16.msra.mxu2 %v996_v7 }
  0x2e   :  { %262 = vmatmul.bf16.vlgmr.msra.gmra.mxu0 %v980_v8  ;;  %302 = vmatmul.bf16.vlgmr.msra.gmra.mxu2 %v988_v9 }
  0x2f   :  { %717 = vmatpush.bf16.msra.mxu1 %v1005_v30  ;;  %1026 = vmatpush.bf16.msra.mxu3 %v1005_v30 }
  0x33   :  { %718 = vmatpush.bf16.msra.mxu1 %v1004_v31  ;;  %1027 = vmatpush.bf16.msra.mxu3 %v1004_v31 }
  0x3e   :  { %267 = vmatmul.bf16.gmra.mxu0 %v981_v10  ;;  %307 = vmatmul.bf16.gmra.mxu2 %v989_v11 }
  0x4e   :  { %272 = vmatmul.bf16.gmra.mxu0 %v982_v12  ;;  %312 = vmatmul.bf16.gmra.mxu2 %v990_v13 }
  0x5e   :  { %277 = vmatmul.bf16.gmra.mxu0 %v983_v14  ;;  %317 = vmatmul.bf16.gmra.mxu2 %v991_v15 }
  0x6e   :  { %282 = vmatmul.bf16.gmra.mxu0 %v984_v16  ;;  %322 = vmatmul.bf16.gmra.mxu2 %v992_v17 }
  0x7e   :  { %287 = vmatmul.bf16.gmra.mxu0 %v985_v18  ;;  %327 = vmatmul.bf16.gmra.mxu2 %v993_v19 }
  0x8e   :  { %292 = vmatmul.bf16.gmra.mxu0 %v986_v20  ;;  %332 = vmatmul.bf16.gmra.mxu2 %v994_v21 }
  0x9e   :  { %297 = vmatmul.bf16.gmra.mxu0 %v987_v26  ;;  %337 = vmatmul.bf16.gmra.mxu2 %v995_v27 }
  0xab   :  { %v263_v32 = vpop.f32.mrf.mxu0 }
  0xac   :  { %v375_v33 = vmul.f32 0.044715, %v263_v32  ;;  %v343_v5 = vmul.f32 0.5, %v263_v32 }
  0xae   :  { %v407_v34 = vmul.f32 %v375_v33, %v263_v32 }
  0xb0   :  { %v439_v35 = vmul.f32 %v407_v34, %v263_v32 }
  0xb1   :  { %v303_v36 = vpop.f32.mrf.mxu2 }
  0xb2   :  { %v391_v37 = vmul.f32 0.044715, %v303_v36  ;;  %v471_v38 = vadd.f32 %v439_v35, %v263_v32  ;;  %v359_v23 = vmul.f32 0.5, %v303_v36 }
  0xb3   :  { %v265_v39 = vpop.f32.mrf.mxu0 }
  0xb4   :  { %v423_v40 = vmul.f32 %v391_v37, %v303_v36  ;;  %v376_v41 = vmul.f32 0.044715, %v265_v39  ;;  %v503_v44 = vmul.f32 0.7978846, %v471_v38  ;;  %v344_v6 = vmul.f32 0.5, %v265_v39 }
  0xb6   :  { %v455_v42 = vmul.f32 %v423_v40, %v303_v36  ;;  %v408_v43 = vmul.f32 %v376_v41, %v265_v39  ;;  %1036 = vtanh.f32 %v503_v44 }
  0xb8   :  { %v440_v45 = vmul.f32 %v408_v43, %v265_v39  ;;  %v487_v46 = vadd.f32 %v455_v42, %v303_v36 }
  0xb9   :  { %v305_v47 = vpop.f32.mrf.mxu2 }
  0xba   :  { %v392_v48 = vmul.f32 0.044715, %v305_v47  ;;  %v472_v49 = vadd.f32 %v440_v45, %v265_v39  ;;  %v519_v54 = vmul.f32 0.7978846, %v487_v46  ;;  %v360_v24 = vmul.f32 0.5, %v305_v47 }
  0xbb   :  { %v1239_v50 = vpop.f32.mrf.mxu0 }
  0xbc   :  { %v424_v51 = vmul.f32 %v392_v48, %v305_v47  ;;  %v377_v52 = vmul.f32 0.044715, %v1239_v50  ;;  %v504_v53 = vmul.f32 0.7978846, %v472_v49  ;;  %v1037_v57 = vpop.eup %1036 }
  0xbd   :  { %v567_v1 = vadd.f32 1.0, %v1037_v57 }
  0xbe   :  { %v456_v55 = vmul.f32 %v424_v51, %v305_v47  ;;  %v409_v56 = vmul.f32 %v377_v52, %v1239_v50  ;;  %1038 = vtanh.f32 %v504_v53 }
  0xbf   :  { %1040 = vtanh.f32 %v519_v54  ;;  %v599_v12 = vmul.f32 %v567_v1, %v343_v5 }
  0xc0   :  { %v441_v58 = vmul.f32 %v409_v56, %v1239_v50  ;;  %v488_v59 = vadd.f32 %v456_v55, %v305_v47  ;;  %v345_v47 = vmul.f32 0.5, %v1239_v50 }
  0xc1   :  { %v1244_v60 = vpop.f32.mrf.mxu2 }
  0xc2   :  { %v393_v61 = vmul.f32 0.044715, %v1244_v60  ;;  %v520_v62 = vmul.f32 0.7978846, %v488_v59  ;;  %v473_v63 = vadd.f32 %v441_v58, %v1239_v50 }
  0xc3   :  { %v270_v0 = vpop.f32.mrf.mxu0 }
  0xc4   :  { %v1039_v2 = vpop.eup %1038  ;;  %v425_v3 = vmul.f32 %v393_v61, %v1244_v60  ;;  %v378_v4 = vmul.f32 0.044715, %v270_v0  ;;  %1042 = vtanh.f32 %v520_v62  ;;  %v505_v11 = vmul.f32 0.7978846, %v473_v63 }
  0xc5   :  { %v568_v7 = vadd.f32 1.0, %v1039_v2  ;;  %v1041_v8 = vpop.eup %1040  ;;  %v346_v48 = vmul.f32 0.5, %v270_v0 }
  0xc6   :  { %v457_v9 = vmul.f32 %v425_v3, %v1244_v60  ;;  %v410_v10 = vmul.f32 %v378_v4, %v270_v0  ;;  %v583_v18 = vadd.f32 1.0, %v1041_v8  ;;  %1044 = vtanh.f32 %v505_v11 }
  0xc7   :  { %v600_v13 = vmul.f32 %v568_v7, %v344_v6 }
  0xc8   :  { %v442_v14 = vmul.f32 %v410_v10, %v270_v0  ;;  %v489_v15 = vadd.f32 %v457_v9, %v1244_v60  ;;  %v615_v30 = vmul.f32 %v583_v18, %v359_v23 }
  0xc9   :  { %v310_v16 = vpop.f32.mrf.mxu2  ;;  %v631_v17 = vpack.c.bf16 %v600_v13, %v599_v12 }
  0xca   :  { %v1043_v19 = vpop.eup %1042  ;;  %v394_v20 = vmul.f32 0.044715, %v310_v16  ;;  %v474_v21 = vadd.f32 %v442_v14, %v270_v0  ;;  %v521_v29 = vmul.f32 0.7978846, %v489_v15  ;;  %v361_v0 = vmul.f32 0.5, %v1244_v60 }
  0xcb   :  { %v1251_v22 = vpop.f32.mrf.mxu0  ;;  %719 = vmatmul.bf16.vlgmr.msra.gmra.mxu1 %v631_v17  ;;  %v584_v25 = vadd.f32 1.0, %v1043_v19  ;;  %v362_v3 = vmul.f32 0.5, %v310_v16 }
  0xcc   :  { %v426_v26 = vmul.f32 %v394_v20, %v310_v16  ;;  %v379_v27 = vmul.f32 0.044715, %v1251_v22  ;;  %v506_v28 = vmul.f32 0.7978846, %v474_v21  ;;  %v1045_v35 = vpop.eup %1044 }
  0xcd   :  { %v616_v31 = vmul.f32 %v584_v25, %v360_v24  ;;  %v569_v43 = vadd.f32 1.0, %v1045_v35 }
  0xce   :  { %v458_v32 = vmul.f32 %v426_v26, %v310_v16  ;;  %v411_v33 = vmul.f32 %v379_v27, %v1251_v22  ;;  %1046 = vtanh.f32 %v506_v28  ;;  %v347_v26 = vmul.f32 0.5, %v1251_v22 }
  0xcf   :  { %v639_v34 = vpack.c.bf16 %v616_v31, %v615_v30  ;;  %1048 = vtanh.f32 %v521_v29  ;;  %v601_v55 = vmul.f32 %v569_v43, %v345_v47 }
  0xd0   :  { %v443_v37 = vmul.f32 %v411_v33, %v1251_v22  ;;  %v490_v38 = vadd.f32 %v458_v32, %v310_v16 }
  0xd1   :  { %v1256_v36 = vpop.f32.mrf.mxu2  ;;  %759 = vmatmul.bf16.vlgmr.msra.gmra.mxu3 %v639_v34 }
  0xd2   :  { %v395_v39 = vmul.f32 0.044715, %v1256_v36  ;;  %v522_v40 = vmul.f32 0.7978846, %v490_v38  ;;  %v475_v41 = vadd.f32 %v443_v37, %v1251_v22 }
  0xd3   :  { %v275_v42 = vpop.f32.mrf.mxu0 }
  0xd4   :  { %v1047_v44 = vpop.eup %1046  ;;  %v427_v45 = vmul.f32 %v395_v39, %v1256_v36  ;;  %v380_v46 = vmul.f32 0.044715, %v275_v42  ;;  %1050 = vtanh.f32 %v522_v40  ;;  %v507_v54 = vmul.f32 0.7978846, %v475_v41 }
  0xd5   :  { %v570_v49 = vadd.f32 1.0, %v1047_v44  ;;  %v1049_v51 = vpop.eup %1048  ;;  %v348_v27 = vmul.f32 0.5, %v275_v42 }
  0xd6   :  { %v459_v52 = vmul.f32 %v427_v45, %v1256_v36  ;;  %v412_v53 = vmul.f32 %v380_v46, %v275_v42  ;;  %v585_v62 = vadd.f32 1.0, %v1049_v51  ;;  %1052 = vtanh.f32 %v507_v54 }
  0xd7   :  { %v602_v56 = vmul.f32 %v570_v49, %v346_v48 }
  0xd8   :  { %v444_v57 = vmul.f32 %v412_v53, %v275_v42  ;;  %v491_v58 = vadd.f32 %v459_v52, %v1256_v36  ;;  %v617_v9 = vmul.f32 %v585_v62, %v361_v0 }
  0xd9   :  { %v315_v59 = vpop.f32.mrf.mxu2  ;;  %v632_v61 = vpack.c.bf16 %v602_v56, %v601_v55 }
  0xda   :  { %v1051_v63 = vpop.eup %1050  ;;  %v396_v1 = vmul.f32 0.044715, %v315_v59  ;;  %v476_v2 = vadd.f32 %v444_v57, %v275_v42  ;;  %v523_v8 = vmul.f32 0.7978846, %v491_v58  ;;  %v363_v42 = vmul.f32 0.5, %v1256_v36 }
  0xdb   :  { %v1264_v50 = vpop.f32.mrf.mxu0  ;;  %724 = vmatmul.bf16.gmra.mxu1 %v632_v61  ;;  %v586_v4 = vadd.f32 1.0, %v1051_v63  ;;  %v364_v45 = vmul.f32 0.5, %v315_v59 }
  0xdc   :  { %v428_v5 = vmul.f32 %v396_v1, %v315_v59  ;;  %v381_v6 = vmul.f32 0.044715, %v1264_v50  ;;  %v508_v7 = vmul.f32 0.7978846, %v476_v2  ;;  %v1053_v14 = vpop.eup %1052 }
  0xdd   :  { %v618_v10 = vmul.f32 %v586_v4, %v362_v3  ;;  %v571_v21 = vadd.f32 1.0, %v1053_v14 }
  0xde   :  { %v460_v11 = vmul.f32 %v428_v5, %v315_v59  ;;  %v413_v12 = vmul.f32 %v381_v6, %v1264_v50  ;;  %1054 = vtanh.f32 %v508_v7  ;;  %v349_v5 = vmul.f32 0.5, %v1264_v50 }
  0xdf   :  { %v640_v13 = vpack.c.bf16 %v618_v10, %v617_v9  ;;  %1056 = vtanh.f32 %v523_v8  ;;  %v603_v33 = vmul.f32 %v571_v21, %v347_v26 }
  0xe0   :  { %v445_v15 = vmul.f32 %v413_v12, %v1264_v50  ;;  %v492_v17 = vadd.f32 %v460_v11, %v315_v59 }
  0xe1   :  { %v1270_v60 = vpop.f32.mrf.mxu2  ;;  %764 = vmatmul.bf16.gmra.mxu3 %v640_v13 }
  0xe2   :  { %v397_v16 = vmul.f32 0.044715, %v1270_v60  ;;  %v524_v18 = vmul.f32 0.7978846, %v492_v17  ;;  %v477_v19 = vadd.f32 %v445_v15, %v1264_v50 }
  0xe3   :  { %v280_v20 = vpop.f32.mrf.mxu0 }
  0xe4   :  { %v1055_v23 = vpop.eup %1054  ;;  %v429_v24 = vmul.f32 %v397_v16, %v1270_v60  ;;  %v382_v25 = vmul.f32 0.044715, %v280_v20  ;;  %1058 = vtanh.f32 %v524_v18  ;;  %v509_v32 = vmul.f32 0.7978846, %v477_v19 }
  0xe5   :  { %v572_v28 = vadd.f32 1.0, %v1055_v23  ;;  %v1057_v29 = vpop.eup %1056  ;;  %v350_v6 = vmul.f32 0.5, %v280_v20 }
  0xe6   :  { %v461_v30 = vmul.f32 %v429_v24, %v1270_v60  ;;  %v414_v31 = vmul.f32 %v382_v25, %v280_v20  ;;  %v587_v40 = vadd.f32 1.0, %v1057_v29  ;;  %1060 = vtanh.f32 %v509_v32 }
  0xe7   :  { %v604_v34 = vmul.f32 %v572_v28, %v348_v27 }
  0xe8   :  { %v446_v35 = vmul.f32 %v414_v31, %v280_v20  ;;  %v493_v37 = vadd.f32 %v461_v30, %v1270_v60  ;;  %v619_v52 = vmul.f32 %v587_v40, %v363_v42 }
  0xe9   :  { %v320_v38 = vpop.f32.mrf.mxu2  ;;  %v633_v39 = vpack.c.bf16 %v604_v34, %v603_v33 }
  0xea   :  { %v1059_v41 = vpop.eup %1058  ;;  %v398_v43 = vmul.f32 0.044715, %v320_v38  ;;  %v478_v44 = vadd.f32 %v446_v35, %v280_v20  ;;  %v525_v51 = vmul.f32 0.7978846, %v493_v37  ;;  %v365_v20 = vmul.f32 0.5, %v1270_v60 }
  0xeb   :  { %v1278_v22 = vpop.f32.mrf.mxu0  ;;  %729 = vmatmul.bf16.gmra.mxu1 %v633_v39  ;;  %v588_v46 = vadd.f32 1.0, %v1059_v41  ;;  %v366_v24 = vmul.f32 0.5, %v320_v38 }
  0xec   :  { %v430_v47 = vmul.f32 %v398_v43, %v320_v38  ;;  %v383_v48 = vmul.f32 0.044715, %v1278_v22  ;;  %v510_v49 = vmul.f32 0.7978846, %v478_v44  ;;  %v1061_v57 = vpop.eup %1060 }
  0xed   :  { %v620_v53 = vmul.f32 %v588_v46, %v364_v45  ;;  %v573_v2 = vadd.f32 1.0, %v1061_v57 }
  0xee   :  { %v462_v54 = vmul.f32 %v430_v47, %v320_v38  ;;  %v415_v55 = vmul.f32 %v383_v48, %v1278_v22  ;;  %1062 = vtanh.f32 %v510_v49  ;;  %v351_v47 = vmul.f32 0.5, %v1278_v22 }
  0xef   :  { %v641_v56 = vpack.c.bf16 %v620_v53, %v619_v52  ;;  %1064 = vtanh.f32 %v525_v51  ;;  %v605_v12 = vmul.f32 %v573_v2, %v349_v5 }
  0xf0   :  { %v447_v58 = vmul.f32 %v415_v55, %v1278_v22  ;;  %v494_v61 = vadd.f32 %v462_v54, %v320_v38 }
  0xf1   :  { %v1284_v36 = vpop.f32.mrf.mxu2  ;;  %769 = vmatmul.bf16.gmra.mxu3 %v641_v56 }
  0xf2   :  { %v399_v59 = vmul.f32 0.044715, %v1284_v36  ;;  %v526_v62 = vmul.f32 0.7978846, %v494_v61  ;;  %v479_v63 = vadd.f32 %v447_v58, %v1278_v22 }
  0xf3   :  { %v285_v1 = vpop.f32.mrf.mxu0 }
  0xf4   :  { %v1063_v0 = vpop.eup %1062  ;;  %v431_v3 = vmul.f32 %v399_v59, %v1284_v36  ;;  %v384_v4 = vmul.f32 0.044715, %v285_v1  ;;  %1066 = vtanh.f32 %v526_v62  ;;  %v511_v11 = vmul.f32 0.7978846, %v479_v63 }
  0xf5   :  { %v574_v7 = vadd.f32 1.0, %v1063_v0  ;;  %v1065_v8 = vpop.eup %1064  ;;  %v352_v48 = vmul.f32 0.5, %v285_v1 }
  0xf6   :  { %v463_v9 = vmul.f32 %v431_v3, %v1284_v36  ;;  %v416_v10 = vmul.f32 %v384_v4, %v285_v1  ;;  %v589_v18 = vadd.f32 1.0, %v1065_v8  ;;  %1068 = vtanh.f32 %v511_v11 }
  0xf7   :  { %v606_v13 = vmul.f32 %v574_v7, %v350_v6 }
  0xf8   :  { %v448_v14 = vmul.f32 %v416_v10, %v285_v1  ;;  %v495_v15 = vadd.f32 %v463_v9, %v1284_v36  ;;  %v621_v30 = vmul.f32 %v589_v18, %v365_v20 }
  0xf9   :  { %v325_v17 = vpop.f32.mrf.mxu2  ;;  %v634_v16 = vpack.c.bf16 %v606_v13, %v605_v12 }
  0xfa   :  { %v1067_v19 = vpop.eup %1066  ;;  %v400_v21 = vmul.f32 0.044715, %v325_v17  ;;  %v480_v23 = vadd.f32 %v448_v14, %v285_v1  ;;  %v527_v29 = vmul.f32 0.7978846, %v495_v15  ;;  %v367_v1 = vmul.f32 0.5, %v1284_v36 }
  0xfb   :  { %v1292_v50 = vpop.f32.mrf.mxu0  ;;  %734 = vmatmul.bf16.gmra.mxu1 %v634_v16  ;;  %v590_v25 = vadd.f32 1.0, %v1067_v19  ;;  %v368_v3 = vmul.f32 0.5, %v325_v17 }
  0xfc   :  { %v432_v26 = vmul.f32 %v400_v21, %v325_v17  ;;  %v385_v27 = vmul.f32 0.044715, %v1292_v50  ;;  %v512_v28 = vmul.f32 0.7978846, %v480_v23  ;;  %v1069_v35 = vpop.eup %1068 }
  0xfd   :  { %v622_v31 = vmul.f32 %v590_v25, %v366_v24  ;;  %v575_v44 = vadd.f32 1.0, %v1069_v35 }
  0xfe   :  { %v464_v32 = vmul.f32 %v432_v26, %v325_v17  ;;  %v417_v33 = vmul.f32 %v385_v27, %v1292_v50  ;;  %1070 = vtanh.f32 %v512_v28  ;;  %v353_v26 = vmul.f32 0.5, %v1292_v50 }
  0xff   :  { %v642_v34 = vpack.c.bf16 %v622_v31, %v621_v30  ;;  %1072 = vtanh.f32 %v527_v29  ;;  %v607_v55 = vmul.f32 %v575_v44, %v351_v47 }
 0x100   :  { %v449_v37 = vmul.f32 %v417_v33, %v1292_v50  ;;  %v496_v39 = vadd.f32 %v464_v32, %v325_v17 }
 0x101   :  { %v1298_v60 = vpop.f32.mrf.mxu2  ;;  %774 = vmatmul.bf16.gmra.mxu3 %v642_v34 }
 0x102   :  { %v401_v38 = vmul.f32 0.044715, %v1298_v60  ;;  %v528_v40 = vmul.f32 0.7978846, %v496_v39  ;;  %v481_v41 = vadd.f32 %v449_v37, %v1292_v50 }
 0x103   :  { %v290_v43 = vpop.f32.mrf.mxu0 }
 0x104   :  { %v1071_v42 = vpop.eup %1070  ;;  %v433_v45 = vmul.f32 %v401_v38, %v1298_v60  ;;  %v386_v46 = vmul.f32 0.044715, %v290_v43  ;;  %1074 = vtanh.f32 %v528_v40  ;;  %v513_v54 = vmul.f32 0.7978846, %v481_v41 }
 0x105   :  { %v576_v49 = vadd.f32 1.0, %v1071_v42  ;;  %v1073_v51 = vpop.eup %1072  ;;  %v354_v27 = vmul.f32 0.5, %v290_v43 }
 0x106   :  { %v465_v52 = vmul.f32 %v433_v45, %v1298_v60  ;;  %v418_v53 = vmul.f32 %v386_v46, %v290_v43  ;;  %v591_v62 = vadd.f32 1.0, %v1073_v51  ;;  %1076 = vtanh.f32 %v513_v54 }
 0x107   :  { %v608_v56 = vmul.f32 %v576_v49, %v352_v48 }
 0x108   :  { %v450_v57 = vmul.f32 %v418_v53, %v290_v43  ;;  %v497_v58 = vadd.f32 %v465_v52, %v1298_v60  ;;  %v623_v9 = vmul.f32 %v591_v62, %v367_v1 }
 0x109   :  { %v330_v61 = vpop.f32.mrf.mxu2  ;;  %v635_v59 = vpack.c.bf16 %v608_v56, %v607_v55 }
 0x10a   :  { %v1075_v63 = vpop.eup %1074  ;;  %v402_v2 = vmul.f32 0.044715, %v330_v61  ;;  %v482_v0 = vadd.f32 %v450_v57, %v290_v43  ;;  %v529_v8 = vmul.f32 0.7978846, %v497_v58  ;;  %v369_v43 = vmul.f32 0.5, %v1298_v60 }
 0x10b   :  { %v1306_v22 = vpop.f32.mrf.mxu0  ;;  %739 = vmatmul.bf16.gmra.mxu1 %v635_v59  ;;  %v592_v4 = vadd.f32 1.0, %v1075_v63  ;;  %v370_v45 = vmul.f32 0.5, %v330_v61 }
 0x10c   :  { %v434_v5 = vmul.f32 %v402_v2, %v330_v61  ;;  %v387_v6 = vmul.f32 0.044715, %v1306_v22  ;;  %v514_v7 = vmul.f32 0.7978846, %v482_v0  ;;  %v1077_v14 = vpop.eup %1076 }
 0x10d   :  { %v624_v10 = vmul.f32 %v592_v4, %v368_v3  ;;  %v577_v23 = vadd.f32 1.0, %v1077_v14 }
 0x10e   :  { %v466_v11 = vmul.f32 %v434_v5, %v330_v61  ;;  %v419_v12 = vmul.f32 %v387_v6, %v1306_v22  ;;  %1078 = vtanh.f32 %v514_v7  ;;  %v355_v5 = vmul.f32 0.5, %v1306_v22 }
 0x10f   :  { %v643_v13 = vpack.c.bf16 %v624_v10, %v623_v9  ;;  %1080 = vtanh.f32 %v529_v8  ;;  %v609_v33 = vmul.f32 %v577_v23, %v353_v26 }
 0x110   :  { %v451_v15 = vmul.f32 %v419_v12, %v1306_v22  ;;  %v498_v16 = vadd.f32 %v466_v11, %v330_v61 }
 0x111   :  { %v1312_v36 = vpop.f32.mrf.mxu2  ;;  %779 = vmatmul.bf16.gmra.mxu3 %v643_v13 }
 0x112   :  { %v403_v17 = vmul.f32 0.044715, %v1312_v36  ;;  %v530_v18 = vmul.f32 0.7978846, %v498_v16  ;;  %v483_v19 = vadd.f32 %v451_v15, %v1306_v22  ;;  %v371_v22 = vmul.f32 0.5, %v1312_v36 }
 0x113   :  { %v295_v21 = vpop.f32.mrf.mxu0 }
 0x114   :  { %v1079_v20 = vpop.eup %1078  ;;  %v435_v24 = vmul.f32 %v403_v17, %v1312_v36  ;;  %v388_v25 = vmul.f32 0.044715, %v295_v21  ;;  %1082 = vtanh.f32 %v530_v18  ;;  %v515_v32 = vmul.f32 0.7978846, %v483_v19 }
 0x115   :  { %v578_v28 = vadd.f32 1.0, %v1079_v20  ;;  %v1081_v29 = vpop.eup %1080  ;;  %v356_v6 = vmul.f32 0.5, %v295_v21 }
 0x116   :  { %v467_v30 = vmul.f32 %v435_v24, %v1312_v36  ;;  %v420_v31 = vmul.f32 %v388_v25, %v295_v21  ;;  %v593_v40 = vadd.f32 1.0, %v1081_v29  ;;  %1084 = vtanh.f32 %v515_v32 }
 0x117   :  { %v610_v34 = vmul.f32 %v578_v28, %v354_v27 }
 0x118   :  { %v452_v35 = vmul.f32 %v420_v31, %v295_v21  ;;  %v499_v37 = vadd.f32 %v467_v30, %v1312_v36  ;;  %v625_v52 = vmul.f32 %v593_v40, %v369_v43 }
 0x119   :  { %v335_v39 = vpop.f32.mrf.mxu2  ;;  %v636_v38 = vpack.c.bf16 %v610_v34, %v609_v33 }
 0x11a   :  { %v1083_v41 = vpop.eup %1082  ;;  %v404_v44 = vmul.f32 0.044715, %v335_v39  ;;  %v484_v42 = vadd.f32 %v452_v35, %v295_v21  ;;  %v531_v51 = vmul.f32 0.7978846, %v499_v37  ;;  %v372_v21 = vmul.f32 0.5, %v335_v39 }
 0x11b   :  { %v1320_v50 = vpop.f32.mrf.mxu0  ;;  %744 = vmatmul.bf16.gmra.mxu1 %v636_v38  ;;  %v594_v46 = vadd.f32 1.0, %v1083_v41 }
 0x11c   :  { %v436_v47 = vmul.f32 %v404_v44, %v335_v39  ;;  %v389_v48 = vmul.f32 0.044715, %v1320_v50  ;;  %v516_v49 = vmul.f32 0.7978846, %v484_v42  ;;  %v1085_v57 = vpop.eup %1084  ;;  %v357_v36 = vmul.f32 0.5, %v1320_v50 }
 0x11d   :  { %v626_v53 = vmul.f32 %v594_v46, %v370_v45  ;;  %v579_v0 = vadd.f32 1.0, %v1085_v57 }
 0x11e   :  { %v468_v54 = vmul.f32 %v436_v47, %v335_v39  ;;  %v421_v55 = vmul.f32 %v389_v48, %v1320_v50  ;;  %1086 = vtanh.f32 %v516_v49 }
 0x11f   :  { %v644_v56 = vpack.c.bf16 %v626_v53, %v625_v52  ;;  %1088 = vtanh.f32 %v531_v51  ;;  %v611_v12 = vmul.f32 %v579_v0, %v355_v5 }
 0x120   :  { %v453_v58 = vmul.f32 %v421_v55, %v1320_v50  ;;  %v500_v59 = vadd.f32 %v468_v54, %v335_v39 }
 0x121   :  { %v338_v60 = vpop.f32.mrf.mxu2  ;;  %784 = vmatmul.bf16.gmra.mxu3 %v644_v56 }
 0x122   :  { %v405_v61 = vmul.f32 0.044715, %v338_v60  ;;  %v532_v62 = vmul.f32 0.7978846, %v500_v59  ;;  %v485_v63 = vadd.f32 %v453_v58, %v1320_v50  ;;  %v373_v46 = vmul.f32 0.5, %v338_v60 }
 0x123   :  { %v300_v2 = vpop.f32.mrf.mxu0 }
 0x124   :  { %v1087_v1 = vpop.eup %1086  ;;  %v437_v3 = vmul.f32 %v405_v61, %v338_v60  ;;  %v390_v4 = vmul.f32 0.044715, %v300_v2  ;;  %1090 = vtanh.f32 %v532_v62  ;;  %v517_v11 = vmul.f32 0.7978846, %v485_v63 }
 0x125   :  { %v580_v7 = vadd.f32 1.0, %v1087_v1  ;;  %v1089_v8 = vpop.eup %1088  ;;  %v358_v39 = vmul.f32 0.5, %v300_v2 }
 0x126   :  { %v469_v9 = vmul.f32 %v437_v3, %v338_v60  ;;  %v422_v10 = vmul.f32 %v390_v4, %v300_v2  ;;  %v595_v18 = vadd.f32 1.0, %v1089_v8  ;;  %1092 = vtanh.f32 %v517_v11 }
 0x127   :  { %v612_v13 = vmul.f32 %v580_v7, %v356_v6 }
 0x128   :  { %v454_v14 = vmul.f32 %v422_v10, %v300_v2  ;;  %v501_v15 = vadd.f32 %v469_v9, %v338_v60  ;;  %v627_v28 = vmul.f32 %v595_v18, %v371_v22 }
 0x129   :  { %v340_v16 = vpop.f32.mrf.mxu2  ;;  %v637_v17 = vpack.c.bf16 %v612_v13, %v611_v12 }
 0x12a   :  { %v1091_v19 = vpop.eup %1090  ;;  %v486_v23 = vadd.f32 %v454_v14, %v300_v2  ;;  %v406_v20 = vmul.f32 0.044715, %v340_v16  ;;  %v533_v27 = vmul.f32 0.7978846, %v501_v15  ;;  %v374_v47 = vmul.f32 0.5, %v340_v16 }
 0x12b   :  { %749 = vmatmul.bf16.gmra.mxu1 %v637_v17  ;;  %v596_v24 = vadd.f32 1.0, %v1091_v19 }
 0x12c   :  { %v518_v25 = vmul.f32 0.7978846, %v486_v23  ;;  %v438_v26 = vmul.f32 %v406_v20, %v340_v16  ;;  %v1093_v32 = vpop.eup %1092 }
 0x12d   :  { %v628_v29 = vmul.f32 %v596_v24, %v372_v21  ;;  %v581_v35 = vadd.f32 1.0, %v1093_v32 }
 0x12e   :  { %1094 = vtanh.f32 %v518_v25  ;;  %v470_v30 = vmul.f32 %v438_v26, %v340_v16 }
 0x12f   :  { %v645_v31 = vpack.c.bf16 %v628_v29, %v627_v28  ;;  %1096 = vtanh.f32 %v533_v27  ;;  %v613_v41 = vmul.f32 %v581_v35, %v357_v36 }
 0x130   :  { %v502_v33 = vadd.f32 %v470_v30, %v340_v16 }
 0x131   :  { %789 = vmatmul.bf16.gmra.mxu3 %v645_v31 }
 0x132   :  { %v534_v34 = vmul.f32 0.7978846, %v502_v33 }
 0x134   :  { %v1095_v37 = vpop.eup %1094  ;;  %1098 = vtanh.f32 %v534_v34 }
 0x135   :  { %v582_v38 = vadd.f32 1.0, %v1095_v37  ;;  %v1097_v40 = vpop.eup %1096 }
 0x136   :  { %v597_v43 = vadd.f32 1.0, %v1097_v40 }
 0x137   :  { %v614_v44 = vmul.f32 %v582_v38, %v358_v39 }
 0x138   :  { %v629_v49 = vmul.f32 %v597_v43, %v373_v46 }
 0x139   :  { %v638_v42 = vpack.c.bf16 %v614_v44, %v613_v41 }
 0x13a   :  { %v1099_v45 = vpop.eup %1098 }
 0x13b   :  { %754 = vmatmul.bf16.gmra.mxu1 %v638_v42  ;;  %v598_v48 = vadd.f32 1.0, %v1099_v45 }
 0x13d   :  { %v630_v51 = vmul.f32 %v598_v48, %v374_v47 }
 0x13f   :  { %v646_v52 = vpack.c.bf16 %v630_v51, %v629_v49 }
 0x141   :  { %794 = vmatmul.bf16.gmra.mxu3 %v646_v52 }
 0x148   :  { %v720_v53 = vpop.f32.mrf.mxu1 }
 0x149   :  { %800 = vst [vmem:[#allocation8] sm:$0xff] %v720_v53 }
 0x150   :  { %v722_v54 = vpop.f32.mrf.mxu1 }
 0x151   :  { %801 = vst [vmem:[#allocation8 + $0x8] sm:$0xff] %v722_v54 }
 0x154   :  { %v760_v50 = vpop.f32.mrf.mxu3 }
 0x155   :  { %816 = vst [vmem:[#allocation8 + $0x80] sm:$0xff] %v760_v50 }
 0x158   :  { %v725_v55 = vpop.f32.mrf.mxu1 }
 0x159   :  { %802 = vst [vmem:[#allocation8 + $0x10] sm:$0xff] %v725_v55 }
 0x15c   :  { %v762_v56 = vpop.f32.mrf.mxu3 }
 0x15d   :  { %817 = vst [vmem:[#allocation8 + $0x88] sm:$0xff] %v762_v56 }
 0x160   :  { %v727_v57 = vpop.f32.mrf.mxu1 }
 0x161   :  { %803 = vst [vmem:[#allocation8 + $0x18] sm:$0xff] %v727_v57 }
 0x164   :  { %v765_v58 = vpop.f32.mrf.mxu3 }
 0x165   :  { %818 = vst [vmem:[#allocation8 + $0x90] sm:$0xff] %v765_v58 }
 0x168   :  { %v730_v59 = vpop.f32.mrf.mxu1 }
 0x169   :  { %804 = vst [vmem:[#allocation8 + $0x20] sm:$0xff] %v730_v59 }
 0x16c   :  { %v767_v60 = vpop.f32.mrf.mxu3 }
 0x16d   :  { %819 = vst [vmem:[#allocation8 + $0x98] sm:$0xff] %v767_v60 }
 0x170   :  { %v732_v61 = vpop.f32.mrf.mxu1 }
 0x171   :  { %805 = vst [vmem:[#allocation8 + $0x28] sm:$0xff] %v732_v61 }
 0x174   :  { %v770_v62 = vpop.f32.mrf.mxu3 }
 0x175   :  { %820 = vst [vmem:[#allocation8 + $0xa0] sm:$0xff] %v770_v62 }
 0x178   :  { %v735_v63 = vpop.f32.mrf.mxu1 }
 0x179   :  { %806 = vst [vmem:[#allocation8 + $0x30] sm:$0xff] %v735_v63 }
 0x17c   :  { %v772_v2 = vpop.f32.mrf.mxu3 }
 0x17d   :  { %821 = vst [vmem:[#allocation8 + $0xa8] sm:$0xff] %v772_v2 }
 0x180   :  { %v737_v0 = vpop.f32.mrf.mxu1 }
 0x181   :  { %807 = vst [vmem:[#allocation8 + $0x38] sm:$0xff] %v737_v0 }
 0x184   :  { %v775_v1 = vpop.f32.mrf.mxu3 }
 0x185   :  { %822 = vst [vmem:[#allocation8 + $0xb0] sm:$0xff] %v775_v1 }
 0x188   :  { %v740_v3 = vpop.f32.mrf.mxu1 }
 0x189   :  { %808 = vst [vmem:[#allocation8 + $0x40] sm:$0xff] %v740_v3 }
 0x18c   :  { %v777_v4 = vpop.f32.mrf.mxu3 }
 0x18d   :  { %823 = vst [vmem:[#allocation8 + $0xb8] sm:$0xff] %v777_v4 }
 0x190   :  { %v742_v5 = vpop.f32.mrf.mxu1 }
 0x191   :  { %809 = vst [vmem:[#allocation8 + $0x48] sm:$0xff] %v742_v5 }
 0x194   :  { %v780_v6 = vpop.f32.mrf.mxu3 }
 0x195   :  { %824 = vst [vmem:[#allocation8 + $0xc0] sm:$0xff] %v780_v6 }
 0x198   :  { %v745_v7 = vpop.f32.mrf.mxu1 }
 0x199   :  { %810 = vst [vmem:[#allocation8 + $0x50] sm:$0xff] %v745_v7 }
 0x19c   :  { %v782_v8 = vpop.f32.mrf.mxu3 }
 0x19d   :  { %825 = vst [vmem:[#allocation8 + $0xc8] sm:$0xff] %v782_v8 }
 0x1a0   :  { %v747_v9 = vpop.f32.mrf.mxu1 }
 0x1a1   :  { %811 = vst [vmem:[#allocation8 + $0x58] sm:$0xff] %v747_v9 }
 0x1a4   :  { %v785_v10 = vpop.f32.mrf.mxu3 }
 0x1a5   :  { %826 = vst [vmem:[#allocation8 + $0xd0] sm:$0xff] %v785_v10 }
 0x1a8   :  { %v750_v11 = vpop.f32.mrf.mxu1 }
 0x1a9   :  { %812 = vst [vmem:[#allocation8 + $0x60] sm:$0xff] %v750_v11 }
 0x1ac   :  { %v787_v12 = vpop.f32.mrf.mxu3 }
 0x1ad   :  { %827 = vst [vmem:[#allocation8 + $0xd8] sm:$0xff] %v787_v12 }
 0x1b0   :  { %v752_v13 = vpop.f32.mrf.mxu1 }
 0x1b1   :  { %813 = vst [vmem:[#allocation8 + $0x68] sm:$0xff] %v752_v13 }
 0x1b4   :  { %v790_v14 = vpop.f32.mrf.mxu3 }
 0x1b5   :  { %828 = vst [vmem:[#allocation8 + $0xe0] sm:$0xff] %v790_v14 }
 0x1b8   :  { %v755_v15 = vpop.f32.mrf.mxu1 }
 0x1b9   :  { %814 = vst [vmem:[#allocation8 + $0x70] sm:$0xff] %v755_v15 }
 0x1bc   :  { %v792_v16 = vpop.f32.mrf.mxu3 }
 0x1bd   :  { %829 = vst [vmem:[#allocation8 + $0xe8] sm:$0xff] %v792_v16 }
 0x1c0   :  { %v757_v17 = vpop.f32.mrf.mxu1 }
 0x1c1   :  { %815 = vst [vmem:[#allocation8 + $0x78] sm:$0xff] %v757_v17 }
 0x1c4   :  { %v795_v18 = vpop.f32.mrf.mxu3 }
 0x1c5   :  { %830 = vst [vmem:[#allocation8 + $0xf0] sm:$0xff] %v795_v18 }
 0x1cc   :  { %v797_v19 = vpop.f32.mrf.mxu3 }
 0x1cd   :  { %831 = vst [vmem:[#allocation8 + $0xf8] sm:$0xff] %v797_v19 }
 0x1ce   :  { %844 = dma.vmem_to_hbm [thread:$0]  %s837_s2, 4096, %s839_s30, [#allocation4], %s1208_s4, %s1208_s4, %s1209_s5  }
 0x1cf   :  { %1200 = dma.done.wait [#allocation4], 4096  }
 0x1d0   :  { %1201 = vsyncadd [#allocation4], 4294963200 }
 0x1d1   :  { %849 = vsyncpa [#allocation3], 1 }
 0x1d2   :  { %850 = vsyncpa [#allocation6], 1 }
 0x1d3   :  { %851 = vsyncpa [#allocation4], 1 }

</bundles_post_ra>
